<compile_context>
chip_gen: v7x
topology: tpu7x:2x2x1
jax: 0.10.0
libtpu: 0.0.40
codegen_flags: <defaults>
</compile_context>

<pallas_src>
import jax
import jax.numpy as jnp
from jax.experimental import pallas as pl
from jax.experimental.pallas import tpu as pltpu


def _vmem_budget_bytes():
    """Generation-aware (block budget, vmem_limit_bytes)."""
    phys = 64 * 1024 * 1024                      # conservative default (v7x per-TC VMEM)
    try:
        phys = int(pltpu.get_tpu_info().vmem_capacity_bytes)
    except Exception:
        pass
    if phys >= 100 * 1024 * 1024:                # v5e / v6e: 128 MiB physical VMEM
        return 32 * 1024 * 1024, 64 * 1024 * 1024
    return 12 * 1024 * 1024, 32 * 1024 * 1024    # v7x: 64 MiB physical VMEM


def _make_downsample_kernel(nb):
    def kernel(wk_ref, sel_ref, x_ref, o_ref):
        # wk_ref : (Cout*Ho, Cin*Ho)  resident identity-expanded weight
        # sel_ref: (s*Wp, Wo)         resident 0/1 column-selection matrix
        # x_ref  : (nb, Cin*Ho, s*Wp) raw (row-grouped) activations for nb images
        # o_ref  : (nb, Cout*Ho, Wo)
        wk = wk_ref[...]
        sel = sel_ref[...]
        for b in range(nb):                      # static unroll, nb <= 32
            # Column selection on the MXU: picks x[n, c, s*h, s*w] exactly
            # (exact 0/1 weights -> no precision change), dropping odd rows/cols.
            xs = jnp.dot(x_ref[b], sel, preferred_element_type=jnp.float32)
            xs = xs.astype(x_ref.dtype)
            # Channel mix over the merged (channel, out-row) axis.
            y = jnp.dot(wk, xs, preferred_element_type=jnp.float32)
            o_ref[b] = y.astype(o_ref.dtype)
    return kernel


def downsample_clean_forward(x, weight, stride=2):
    """x: (N, Cin, H, W); weight: (Cout, Cin, 1, 1) -> (N, Cout, Ho, Wo)."""
    n, cin, h, w = x.shape
    cout = weight.shape[0]
    ho = (h - 1) // stride + 1
    wo = (w - 1) // stride + 1

    # Pad H/W up to multiples of `stride` so the row-group view is a free
    # row-major reshape.  Padded rows/cols sit at non-sampled positions, so they
    # never reach the output (edge case only; no-op for even dims).
    hp, wp = ho * stride, wo * stride
    if (hp, wp) != (h, w):
        x = jnp.pad(x, ((0, 0), (0, 0), (0, hp - h), (0, wp - w)))

    # Free, contiguous view: one merged row per (channel, output-row) holding the
    # `stride` input rows that feed it, concatenated.  No data movement.
    xg = x.reshape(n, cin * ho, stride * wp)                    # (N, Cin*Ho, s*Wp)

    # Tiny constant matrices (built once by XLA, resident in VMEM in the kernel).
    w_mat = weight.reshape(cout, cin).astype(x.dtype)           # (Cout, Cin)
    wk = jnp.kron(w_mat, jnp.eye(ho, dtype=x.dtype))            # (Cout*Ho, Cin*Ho)
    sel = (jnp.arange(stride * wp)[:, None]
           == (stride * jnp.arange(wo))[None, :]).astype(x.dtype)  # (s*Wp, Wo)

    itemsize = x.dtype.itemsize
    bytes_per_image = (cin * ho * stride * wp + cout * ho * wo) * itemsize
    const_bytes = (wk.size + sel.size) * itemsize
    budget, vmem_limit = _vmem_budget_bytes()

    # Images per grid step: fill the (double-buffered) budget, keep >= 2 grid
    # steps when possible (pipelining + v7x megacore), cap the static unroll.
    nb = max(1, int((budget - const_bytes) // (2 * bytes_per_image)))
    if n >= 2:
        nb = min(nb, (n + 1) // 2)
    nb = int(max(1, min(nb, 32, n)))
    grid = (pl.cdiv(n, nb),)

    macs_per_image = cin * ho * (stride * wp) * wo + (cout * ho) * (cin * ho) * wo
    cost = pl.CostEstimate(
        flops=2 * n * macs_per_image,
        transcendentals=0,
        bytes_accessed=(xg.size + n * cout * ho * wo + wk.size + sel.size) * itemsize,
    )

    out_flat = pl.pallas_call(
        _make_downsample_kernel(nb),
        out_shape=jax.ShapeDtypeStruct((n, cout * ho, wo), x.dtype),
        grid=grid,
        in_specs=[
            # Constants: pinned blocks, stay resident in VMEM across the grid.
            pl.BlockSpec((cout * ho, cin * ho), lambda i: (0, 0)),
            pl.BlockSpec((stride * wp, wo), lambda i: (0, 0)),
            # Activations: nb whole images per step, fully contiguous in HBM.
            pl.BlockSpec((nb, cin * ho, stride * wp), lambda i: (i, 0, 0)),
        ],
        out_specs=pl.BlockSpec((nb, cout * ho, wo), lambda i: (i, 0, 0)),
        compiler_params=pltpu.CompilerParams(
            dimension_semantics=("parallel",),
            vmem_limit_bytes=vmem_limit,
        ),
        cost_estimate=cost,
    )(wk, sel, xg)

    # Free reshape (row-major contiguous), no transpose.
    return out_flat.reshape(n, cout, ho, wo)


if __name__ == "__main__":
    key = jax.random.PRNGKey(0)
    k_x, k_w = jax.random.split(key)

    # Small shapes consistent with the module: batch=2, in_planes=4,
    # out_planes=8, spatial=16x16, stride=2.
    N, CIN, COUT, H, W, STRIDE = 2, 4, 8, 16, 16, 2

    x = jax.random.normal(k_x, (N, CIN, H, W), dtype=jnp.float32)
    weight = jax.random.normal(k_w, (COUT, CIN, 1, 1), dtype=jnp.float32) * 0.1

    fwd = jax.jit(lambda xx, ww: downsample_clean_forward(xx, ww, stride=STRIDE))
    out = jax.block_until_ready(fwd(x, weight))

    # Reference (pure JAX): strided subsample + channel einsum.
    ref = jnp.einsum(
        "oc,nchw->nohw", weight.reshape(COUT, CIN), x[:, :, ::STRIDE, ::STRIDE]
    )
    assert out.shape == (N, COUT, H // STRIDE, W // STRIDE), out.shape
    assert jnp.allclose(out, ref, atol=1e-5, rtol=1e-5), "mismatch vs reference"

    print("KERNEL_OK")
</pallas_src>

<mosaic_0001>
module attributes {stable_mosaic.version = 11 : i64} {
  func.func @kernel(%arg0: i32, %arg1: memref<64x32xf32, #tpu.memory_space<vmem>>, %arg2: memref<32x8xf32, #tpu.memory_space<vmem>>, %arg3: memref<1x32x32xf32, #tpu.memory_space<vmem>>, %arg4: memref<1x64x8xf32, #tpu.memory_space<vmem>>) attributes {dimension_semantics = [#tpu.dimension_semantics<parallel>], iteration_bounds = array<i64: 2>, scalar_prefetch = 0 : i64, scratch_operands = 0 : i64, tpu.core_type = #tpu.core_type<tc>, window_params = [{pipeline_mode = #tpu.pipeline_mode<synchronous>, transform_indices = @transform_0, window_bounds = array<i64: 64, 32>}, {pipeline_mode = #tpu.pipeline_mode<synchronous>, transform_indices = @transform_1, window_bounds = array<i64: 32, 8>}, {transform_indices = @transform_2, window_bounds = array<i64: 1, 32, 32>}, {transform_indices = @transform_3, window_bounds = array<i64: 1, 64, 8>}]} {
    %c0 = arith.constant 0 : index
    %c0_0 = arith.constant 0 : index
    %0 = vector.load %arg1[%c0, %c0_0] : memref<64x32xf32, #tpu.memory_space<vmem>>, vector<64x32xf32>
    %c0_1 = arith.constant 0 : index
    %c0_2 = arith.constant 0 : index
    %1 = vector.load %arg2[%c0_1, %c0_2] : memref<32x8xf32, #tpu.memory_space<vmem>>, vector<32x8xf32>
    %c0_3 = arith.constant 0 : index
    %c0_4 = arith.constant 0 : index
    %c0_5 = arith.constant 0 : index
    %2 = vector.load %arg3[%c0_3, %c0_4, %c0_5] : memref<1x32x32xf32, #tpu.memory_space<vmem>>, vector<1x32x32xf32>
    %3 = vector.shape_cast %2 : vector<1x32x32xf32> to vector<32x32xf32>
    %cst = arith.constant dense<0.000000e+00> : vector<32x8xf32>
    %4 = tpu.matmul %3, %1, %cst {dimension_numbers = #tpu.dot_dimension_numbers<[1], [0], [0], [1], [0, 0, 1, 1], [], []>} : vector<32x32xf32>, vector<32x8xf32>, vector<32x8xf32> -> vector<32x8xf32>
    %cst_6 = arith.constant dense<0.000000e+00> : vector<64x8xf32>
    %5 = tpu.matmul %0, %4, %cst_6 {dimension_numbers = #tpu.dot_dimension_numbers<[1], [0], [0], [1], [0, 0, 1, 1], [], []>} : vector<64x32xf32>, vector<32x8xf32>, vector<64x8xf32> -> vector<64x8xf32>
    %c0_7 = arith.constant 0 : index
    %c0_8 = arith.constant 0 : index
    %c0_9 = arith.constant 0 : index
    %6 = vector.load %arg4[%c0_7, %c0_8, %c0_9] : memref<1x64x8xf32, #tpu.memory_space<vmem>>, vector<1x64x8xf32>
    %7 = vector.shape_cast %6 : vector<1x64x8xf32> to vector<64x8xf32>
    %8 = vector.shape_cast %5 : vector<64x8xf32> to vector<1x64x8xf32>
    tpu.vector_store %arg4[%c0_7, %c0_8, %c0_9], %8 {strides = array<i32>} : memref<1x64x8xf32, #tpu.memory_space<vmem>>, vector<1x64x8xf32>,
    return
  }
  func.func @transform_0(%arg0: i32) -> (i32, i32) {
    %c0_i32 = arith.constant 0 : i32
    %c0_i32_0 = arith.constant 0 : i32
    %c0_i32_1 = arith.constant 0 : i32
    return %c0_i32, %c0_i32_0 : i32, i32
  }
  func.func @transform_1(%arg0: i32) -> (i32, i32) {
    %c0_i32 = arith.constant 0 : i32
    %c0_i32_0 = arith.constant 0 : i32
    %c0_i32_1 = arith.constant 0 : i32
    return %c0_i32, %c0_i32_0 : i32, i32
  }
  func.func @transform_2(%arg0: i32) -> (i32, i32, i32) {
    %c0_i32 = arith.constant 0 : i32
    %c0_i32_0 = arith.constant 0 : i32
    %c0_i32_1 = arith.constant 0 : i32
    return %arg0, %c0_i32, %c0_i32_0 : i32, i32, i32
  }
  func.func @transform_3(%arg0: i32) -> (i32, i32, i32) {
    %c0_i32 = arith.constant 0 : i32
    %c0_i32_0 = arith.constant 0 : i32
    %c0_i32_1 = arith.constant 0 : i32
    return %arg0, %c0_i32, %c0_i32_0 : i32, i32, i32
  }
}

</mosaic_0001>

<bundles_post_ra>
// kernel: _lambda_.1
= control target key start
LH: loop header
LB: loop body
LE: loop exit
PB: predicated region body
PF: predicated region fallthrough
CT: control target
= control target key end

     0   :  { %8 = vsyncpa [#allocation3], 0  ;;  %s884_s0 = inlined_call_operand.vmem [shape: f32[64,32], index: 0, kind: input, shape index: {}]   ;;  %s885_s1 = inlined_call_operand.vmem [shape: f32[32,8], index: 1, kind: input, shape index: {}]   ;;  %s886_s2 = inlined_call_operand.vmem [shape: f32[2,32,32], index: 2, kind: input, shape index: {}]   ;;  %s887_s3 = inlined_call_operand.hbm [shape: f32[2,64,8], index: 3, kind: output, shape index: {}]  }
   0x1   :  { %10 = vsyncpa [#allocation3 + $0x1], 0  ;;  %s725_s12 = smov 0   ;;  %s727_s13 = smov 0  }
   0x2   :  { %s729_s14 = smov 0   ;;  %s731_s15 = smov 0  }
   0x3 LB: > { %s746_s16 = sadd.s32 4294967295, %s700_s15   ;;  %s497_s17 = sadd.s32 4294967294, %s700_s15   ;;  %s700_s15 = sphi %s731_s15, %s893_s15   ;;  %s696_s14 = sphi %s729_s14, %s892_s14   ;;  %s692_s13 = sphi %s727_s13, %s891_s13   ;;  %s688_s12 = sphi %s725_s12, %s890_s12  }
   0x4   : > { %s750_s18 = sadd.s32 1, %s700_s15   ;;  %s91_s19 = sadd.s32 1, %s696_s14 }
   0x5   : > { %s88_s20 = ssub.s32 %s700_s15, %s750_s18  ;;  %p101_p0 = scmp.ne.s32.totalorder %s696_s14, %s692_s13 }
   0x6   : > { %p89_p1 = scmp.eq.s32.totalorder %s88_s20, 0  ;;  %p102_p2 = scmp.eq.s32.totalorder %s746_s16, 1 }
   0x7   : > { %p107_p3 = scmp.ne.s32.totalorder %s692_s13, %s688_s12  ;;  %p108_p4 = scmp.eq.s32.totalorder %s497_s17, 1 }
   0x8   : > { %s761_s21 = scalar_select %p89_p1, %s696_s14, %s91_s19  }
   0x9   : > { %p763_p5 = por %p102_p2, %p101_p0  ;;  %p767_p6 = por %p108_p4, %p107_p3 }
   0xa   : > { %p500_p7 = scmp.ge.s32.totalorder %s700_s15, 1  ;;  %p140_p8 = scmp.lt.s32.totalorder %s700_s15, 3 }
   0xc   : > { %p141_p9 = pnand %p500_p7, %p140_p8 }
   0xd   : > { %v177_v0 = vld [vmem:[%s885_s1] sm:$0xff] (!%p141_p9)  ;;  %v178_v1 = vld [vmem:[%s885_s1 + $0x8] sm:$0xff] (!%p141_p9)  ;;  %v179_v2 = vld [vmem:[%s885_s1 + $0x10] sm:$0xff] (!%p141_p9)  ;;  %p164_p10 = scmp.lt.s32.totalorder (!%p141_p9), %s746_s16, 1  ;;  %vm185_vm0 = vcmask (!%p141_p9), 261120   ;;  %s161_s8 = sand.u32 (!%p141_p9), 1, %s692_s13  }
   0xe   : > { %144 = sbr.rel (%p141_p9) target bundleno = 486 (0x1e6), region = 32  ;;  %v577_v3 = vpack.c.bf16 (!%p141_p9), %v178_v1, %v177_v0  ;;  %v180_v4 = vld [vmem:[%s885_s1 + $0x18] sm:$0xff] (!%p141_p9)  ;;  %v171_v10 = vld [vmem:[%s884_s0 + $0x10] sm:$0xff] (!%p141_p9)  ;;  %v169_v11 = vld [vmem:[%s884_s0] sm:$0xff] (!%p141_p9)  ;;  %vm412_vm1 = vcmask (!%p141_p9), 64512   ;;  %s522_s11 = sshll.u32 (!%p141_p9), %s746_s16, 10 }
   0xf   : > { %v581_v5 = vpack.c.bf16 (!%p141_p9), %v180_v4, %v179_v2  ;;  %568 = vmatprep.mubr.msk.f32.mxu1 (!%p141_p9), %vm185_vm0, %v171_v10  ;;  %v172_v18 = vld [vmem:[%s884_s0 + $0x18] sm:$0xff] (!%p141_p9)  ;;  %v170_v19 = vld [vmem:[%s884_s0 + $0x8] sm:$0xff] (!%p141_p9)  ;;  %v173_v20 = vld [vmem:[%s884_s0 + $0x20] sm:$0xff] (!%p141_p9)  ;;  %s837_s24 = scalar_lea.hbm (!%p141_p9), %s887_s3, %s522_s11  ;;  %s702_s26 = smov (!%p141_p9), [#allocation2]  }
  0x10   : > { %578 = vmatprep.subr.bf16.mxu0 (!%p141_p9), %v577_v3  ;;  %v174_v21 = vld [vmem:[%s884_s0 + $0x28] sm:$0xff] (!%p141_p9)  ;;  %v175_v22 = vld [vmem:[%s884_s0 + $0x30] sm:$0xff] (!%p141_p9)  ;;  %v176_v23 = vld [vmem:[%s884_s0 + $0x38] sm:$0xff] (!%p141_p9)  ;;  %s642_s27 = sshll.u32 (!%p141_p9), %s702_s26, 4  ;;  %s643_s27 = int_to_ptr.vmem [resolvable:$false] %s642_s27 }
  0x11   : > { %580 = vmatpush3.bf16.msra.mxu0 (!%p141_p9), %v577_v3  ;;  %s644_s28 = scalar_lea.vmem (!%p141_p9), %s643_s27, 2048 }
  0x12   : > { %582 = vmatprep.subr.bf16.mxu0 (!%p141_p9), %v581_v5 }
  0x15   : > { %s165_s5 = scalar_select %p164_p10, %s746_s16, 1  ;;  %584 = vmatpush3.bf16.msra.mxu0 %v581_v5 }
  0x16   : > { %s843_s16 = scalar_lea.sflag [#allocation3], %s161_s8 }
  0x17   : > { %s521_s6 = sshll.u32 %s165_s5, 5 }
  0x18   : > { %s168_s9 = scalar_lea.vmem %s886_s2, %s521_s6 }
  0x19   : > { %v181_v6 = vld [vmem:[%s168_s9] sm:$0xff]  ;;  %v182_v7 = vld [vmem:[%s168_s9 + $0x8] sm:$0xff]  ;;  %v183_v8 = vld [vmem:[%s168_s9 + $0x10] sm:$0xff] }
  0x1a   : > { %551 = vmatprep.mubr.msk.f32.mxu0 %vm185_vm0, %v181_v6  ;;  %v184_v9 = vld [vmem:[%s168_s9 + $0x18] sm:$0xff]  ;;  %s501_s9 = sshll.u32 %s161_s8, 6 }
  0x1b   : > { %552 = vmatmul.mubr.msk.f32.vlgmr.msra.gmra.mrb[0].mxu0 %vm185_vm0, %v182_v7  ;;  %s163_s10 = scalar_lea.vmem [#allocation2], %s501_s9 }
  0x1c   : > { %554 = vmatprep.mubr.msk.f32.mxu0 %vm185_vm0, %v183_v8  ;;  %s435_s17 = sshll.u32 %s163_s10, 4  ;;  %s839_s17 = int_to_ptr.vmem [resolvable:$true] %s435_s17 }
  0x1d   : > { %s638_s25 = scalar_lea.vmem %s839_s17, 1024  ;;  %p645_p0 = scmp.lt.s32.totalorder %s839_s17, %s643_s27 }
  0x1e   : > { %p639_p11 = scmp.ne.s32.totalorder %s839_s17, %s638_s25  ;;  %p646_p1 = scmp.lt.s32.totalorder %s644_s28, %s638_s25 }
  0x1f   : > { %555 = vmatmul.mubr.msk.f32.gmra.mrb[2].mxu0 %vm185_vm0, %v184_v9 }
  0x20   : > { %565 = vmatprep.mubr.msk.f32.mxu0 %vm185_vm0, %v169_v11  ;;  %p640_p12 = pnand %p639_p11, %p763_p5  ;;  %p647_p2 = por %p646_p1, %p645_p0 }
  0x22   : > { %p641_p13 = pneg %p640_p12 }
  0x24   : > { %p648_p3 = pnand %p647_p2, %p641_p13 }
  0xee   : > { %v553_v12 = vpop.f32.mrb[0].mxu0 }
  0xef   : > { %v264_v13 = vpop.f32.mrb[1].mxu0 }
  0xf0   : > { %v585_v14 = vpack.c.bf16 %v553_v12, %v264_v13 }
  0xf2   : > { %v556_v15 = vpop.f32.mrb[2].mxu0  ;;  %586 = vmatprep.subr.bf16.mxu0 %v585_v14  ;;  %593 = vmatprep.subr.bf16.mxu1 %v585_v14 }
  0xf3   : > { %v274_v16 = vpop.f32.mrb[3].mxu0  ;;  %588 = vmatpush3.bf16.msra.mxu0 %v585_v14  ;;  %595 = vmatpush3.bf16.msra.mxu1 %v585_v14 }
  0xf4   : > { %v589_v17 = vpack.c.bf16 %v556_v15, %v274_v16 }
  0xf6   : > { %590 = vmatprep.subr.bf16.mxu0 %v589_v17  ;;  %594 = vmatprep.subr.bf16.mxu1 %v589_v17 }
  0xf7   : > { %592 = vmatpush3.bf16.msra.mxu0 %v589_v17  ;;  %596 = vmatpush3.bf16.msra.mxu1 %v589_v17 }
  0xfa   : > { %569 = vmatmul.mubr.msk.f32.vlgmr.msra.gmra.mrb[0].mxu1 %vm185_vm0, %v172_v18  ;;  %566 = vmatmul.mubr.msk.f32.vlgmr.msra.gmra.mrb[4].mxu0 %vm185_vm0, %v170_v19 }
  0xfb   : > { %571 = vmatprep.mubr.msk.f32.mxu1 %vm185_vm0, %v173_v20 }
  0xfe   : > { %572 = vmatmul.mubr.msk.f32.gmra.mrb[2].mxu1 %vm185_vm0, %v174_v21 }
  0xff   : > { %574 = vmatprep.mubr.msk.f32.mxu1 %vm185_vm0, %v175_v22 }
 0x102   : > { %575 = vmatmul.mubr.msk.f32.gmra.mrb[4].mxu1 %vm185_vm0, %v176_v23 }
 0x1cd   : > { %v570_v24 = vpop.f32.mrb[0].mxu1  ;;  %v567_v25 = vpop.f32.mrb[4].mxu0 }
 0x1ce   : > { %416 = vst.msk [vmem:[%s163_s10 + $0x18] sm:$0xff] %vm412_vm1, %v570_v24  ;;  %v383_v26 = vpop.f32.mrb[1].mxu1  ;;  %414 = vst.msk [vmem:[%s163_s10 + $0x8] sm:$0xff] %vm412_vm1, %v567_v25  ;;  %v373_v27 = vpop.f32.mrb[5].mxu0 }
 0x1cf   : > { %415 = vst.msk [vmem:[%s163_s10 + $0x10] sm:$0xff] %vm412_vm1, %v383_v26  ;;  %413 = vst.msk [vmem:[%s163_s10] sm:$0xff] %vm412_vm1, %v373_v27 }
 0x1d1   : > { %v573_v28 = vpop.f32.mrb[2].mxu1 }
 0x1d2   : > { %418 = vst.msk [vmem:[%s163_s10 + $0x28] sm:$0xff] %vm412_vm1, %v573_v28  ;;  %v393_v29 = vpop.f32.mrb[3].mxu1 }
 0x1d3   : > { %417 = vst.msk [vmem:[%s163_s10 + $0x20] sm:$0xff] %vm412_vm1, %v393_v29 }
 0x1d5   : > { %v576_v30 = vpop.f32.mrb[4].mxu1 }
 0x1d6   : > { %420 = vst.msk [vmem:[%s163_s10 + $0x38] sm:$0xff] %vm412_vm1, %v576_v30  ;;  %v403_v31 = vpop.f32.mrb[5].mxu1 }
 0x1d7   : > { %419 = vst.msk [vmem:[%s163_s10 + $0x30] sm:$0xff] %vm412_vm1, %v403_v31 }
 0x1d8   : > { %651 = shalt.err (!%p648_p3)
}
 0x1d9   : > { %s652_s29 = scalar_lea.hbm %s837_s24, 1024  ;;  %s656_s5 = scalar_lea.hbm %s887_s3, 2048 }
 0x1da   : > { %p653_p4 = scmp.ne.s32.totalorder %s837_s24, %s652_s29  ;;  %p657_p9 = scmp.lt.u32.totalorder %s837_s24, %s887_s3 }
 0x1db   : > { %p658_p10 = scmp.lt.u32.totalorder %s656_s5, %s652_s29  ;;  %p660_p12 = scmp.lt.u32.totalorder %s652_s29, %s837_s24 }
 0x1dc   : > { %p654_p7 = pnand %p653_p4, %p763_p5 }
 0x1dd   : > { %p659_p11 = por %p658_p10, %p657_p9 }
 0x1de   : > { %p655_p8 = pneg %p654_p7 }
 0x1df   : > { %p661_p13 = por %p660_p12, %p659_p11 }
 0x1e1   : > { %p662_p0 = pnand %p661_p13, %p655_p8 }
 0x1e3   : > { %665 = shalt.err (!%p662_p0)
}
 0x1e4   : > { %s703_s8 = smov 128   ;;  %s704_s9 = smov 8  }
 0x1e5   : > { %597 = dma.vmem_to_hbm [thread:$0]  (%p763_p5), %s839_s17, 1024, %s837_s24, %s843_s16, %s703_s8, %s703_s8, %s704_s9  }
 0x1e6 PF: > { %p603_p1 = scmp.ge.s32.totalorder %s700_s15, 2  ;;  %s450_s10 = sand.u32 1, %s688_s12  }
 0x1e7   : > { %s451_s11 = scalar_lea.sflag [#allocation3], %s450_s10 }
 0x1e8   : > { %p600_p2 = pnand %p603_p1, %p767_p6 }
 0x1ea   : > { %683 = dma.done.wait (!%p600_p2), %s451_s11, 1024  }
 0x1eb   : > { %685 = vsyncadd (!%p600_p2), %s451_s11, 4294966272  ;;  %p13_p3 = scmp.ge.s32.totalorder %s750_s18, 4   ;;  %s890_s12 = smov %s692_s13 }
 0x1ec   : > { %s891_s13 = smov %s696_s14  ;;  %s892_s14 = smov %s761_s21 }
 0x1ed   : > { %s893_s15 = smov %s750_s18  ;;  %15 = sbr.rel (!%p13_p3) target bundleno = 3 (0x3), region = 67 }
 0x1f4   :  { %456 = vsyncpa [#allocation3], 1 }
 0x1f5   :  { %458 = vsyncpa [#allocation3 + $0x1], 1 }

</bundles_post_ra>
